<compile_context>
chip_gen: v7x
topology: tpu7x:2x2x1
jax: 0.10.0
libtpu: 0.0.40
codegen_flags: <defaults>
</compile_context>

<pallas_src>
import jax
import jax.numpy as jnp
import numpy as np
from jax.experimental import pallas as pl
from jax.experimental.pallas import tpu as pltpu

# --- module hyperparameters (small, consistent with the module signature) ---
CTX_INPUT_DIM = 16
CTX_ENC_HIDDEN = (64,)
HIDDEN = CTX_ENC_HIDDEN[0]
CTX_OUT_DIM = 32
BATCH = 2
SEQ = 8
OUT_FEAT = 2 * CTX_OUT_DIM      # logical output feature width (enc | cmean)

# --- parameter-slab layout (all row sections 8-sublane aligned) ---
def _round8(n):
    return ((n + 7) // 8) * 8

W1_ROW0 = 0                                   # rows [0, 16): w1 (ctx_in, hidden)
B_ROW0 = _round8(CTX_INPUT_DIM)               # row 16: b1, row 17: b2
W2_ROW0 = B_ROW0 + 8                          # rows [24, 88): w2 (hidden, out)
TRI_ROW0 = W2_ROW0 + _round8(HIDDEN)          # rows [88, 96): tri (S, S)
PARAM_ROWS = TRI_ROW0 + _round8(SEQ)          # 96
PARAM_COLS = 128


def ctx_encode_kernel(x_ref, p_ref, o_ref):
    """One batch element per grid step.  x_ref: (S, ctx_in), o_ref: (S, 2*out)."""
    seq = x_ref.shape[0]
    x = x_ref[...]                                                  # (S, ctx_in)

    # Static views into the packed parameter slab (one DMA for all params).
    w1 = p_ref[W1_ROW0:W1_ROW0 + CTX_INPUT_DIM, 0:HIDDEN]           # (ctx_in, hidden)
    b1 = p_ref[B_ROW0:B_ROW0 + 1, 0:HIDDEN]                         # (1, hidden)
    b2 = p_ref[B_ROW0 + 1:B_ROW0 + 2, 0:CTX_OUT_DIM]                # (1, out)
    w2 = p_ref[W2_ROW0:W2_ROW0 + HIDDEN, 0:CTX_OUT_DIM]             # (hidden, out)
    tri = p_ref[TRI_ROW0:TRI_ROW0 + seq, 0:seq]                     # (S, S) prefix-mean op

    # FcModel: Linear(ctx_in, hidden) -> ReLU -> Linear(hidden, ctx_out)
    h = jnp.dot(x, w1, preferred_element_type=jnp.float32) + b1
    h = jnp.maximum(h, 0.0)
    enc = jnp.dot(h, w2, preferred_element_type=jnp.float32) + b2   # (S, out)

    # HistoryCompression 'mean-pool' (window=None, no past): running mean over seq.
    # tri has the 1/(s+1) divide folded in, so one tiny MXU matmul does it.
    cmean = jnp.dot(tri, enc, preferred_element_type=jnp.float32)   # (S, out)

    # history_compressed = [cmean]; append batch_ctx; reverse; cat(dim=1) -> [enc | cmean].
    # Two 32-lane slice stores (per review) -- no in-kernel concat/pad, no wrapper slice.
    o_ref[:, 0:CTX_OUT_DIM] = enc
    o_ref[:, CTX_OUT_DIM:OUT_FEAT] = cmean


def pack_params(w1, b1, w2, b2, seq):
    """Pack all parameters + the (S,S) running-mean operator into one padded slab.

    Built once, outside the per-call path (the previous version rebuilt kron/bias
    packs on every forward)."""
    hidden = w1.shape[1]
    out_dim = w2.shape[1]
    assert w1.shape[0] == CTX_INPUT_DIM and hidden == HIDDEN
    assert w2.shape[0] == hidden and out_dim == CTX_OUT_DIM
    assert hidden <= PARAM_COLS and out_dim <= PARAM_COLS and seq <= PARAM_COLS
    assert seq == SEQ

    # Running-mean operator with the divide folded in: tri[s, t] = (t <= s) / (s + 1)
    s = jnp.arange(seq, dtype=jnp.float32)
    tri = jnp.where(s[None, :] <= s[:, None], 1.0, 0.0) / (s[:, None] + 1.0)

    p = jnp.zeros((PARAM_ROWS, PARAM_COLS), jnp.float32)
    p = p.at[W1_ROW0:W1_ROW0 + CTX_INPUT_DIM, 0:hidden].set(w1)
    p = p.at[B_ROW0, 0:hidden].set(b1.reshape(-1))
    p = p.at[B_ROW0 + 1, 0:out_dim].set(b2.reshape(-1))
    p = p.at[W2_ROW0:W2_ROW0 + hidden, 0:out_dim].set(w2)
    p = p.at[TRI_ROW0:TRI_ROW0 + seq, 0:seq].set(tri)
    return p


@jax.jit
def context_encode_forward(context, params):
    """Pallas implementation of ContextEncodeModule.forward (batched path, no past)."""
    batch, seq, ctx_in = context.shape

    out = pl.pallas_call(
        ctx_encode_kernel,
        out_shape=jax.ShapeDtypeStruct((batch, seq, OUT_FEAT), jnp.float32),
        grid=(batch,),
        in_specs=[
            pl.BlockSpec((None, seq, ctx_in), lambda b: (b, 0, 0)),
            pl.BlockSpec((PARAM_ROWS, PARAM_COLS), lambda b: (0, 0)),  # constant block -> 1 DMA
        ],
        out_specs=pl.BlockSpec((None, seq, OUT_FEAT), lambda b: (b, 0, 0)),
        compiler_params=pltpu.CompilerParams(
            dimension_semantics=("parallel",)),   # lets v7x split batches over 2 TCs
    )(context, params)

    # 'mean-pool' has no reset gate, so history_state is None; the batched branch of
    # ContextEncodeModule.forward returns (batches_with_history, None).
    return out, None


def ref_forward(context, w1, b1, w2, b2):
    """Pure-JAX reference mirroring the PyTorch forward semantics."""
    h = jnp.maximum(context @ w1 + b1, 0.0)
    enc = h @ w2 + b2
    csum = jnp.cumsum(enc, axis=1)
    counts = jnp.arange(1, context.shape[1] + 1, dtype=jnp.float32)[None, :, None]
    cmean = csum / counts
    return jnp.concatenate([enc, cmean], axis=-1)


if __name__ == "__main__":
    key = jax.random.PRNGKey(0)
    k_x, k_w1, k_b1, k_w2, k_b2 = jax.random.split(key, 5)

    # Deterministic parameter init (synthetic; shapes match nn.Linear layers of FcModel).
    w1 = (jax.random.normal(k_w1, (CTX_INPUT_DIM, HIDDEN), jnp.float32)
          * (1.0 / np.sqrt(CTX_INPUT_DIM)))
    b1 = jax.random.normal(k_b1, (HIDDEN,), jnp.float32) * 0.01
    w2 = (jax.random.normal(k_w2, (HIDDEN, CTX_OUT_DIM), jnp.float32)
          * (1.0 / np.sqrt(HIDDEN)))
    b2 = jax.random.normal(k_b2, (CTX_OUT_DIM,), jnp.float32) * 0.01

    context = jax.random.normal(k_x, (BATCH, SEQ, CTX_INPUT_DIM), jnp.float32)

    # Parameter slab built once, outside the hot per-call path.
    params = jax.block_until_ready(pack_params(w1, b1, w2, b2, SEQ))

    out, state = context_encode_forward(context, params)
    out = jax.block_until_ready(out)

    ref = ref_forward(context, w1, b1, w2, b2)
    np.testing.assert_allclose(np.asarray(out), np.asarray(ref), rtol=1e-5, atol=1e-5)
    assert out.shape == (BATCH, SEQ, 2 * CTX_OUT_DIM)
    assert state is None

    print("KERNEL_OK")
</pallas_src>

<mosaic_0001>
module attributes {stable_mosaic.version = 11 : i64} {
  func.func @ctx_encode_kernel(%arg0: i32, %arg1: memref<1x8x16xf32, #tpu.memory_space<vmem>>, %arg2: memref<96x128xf32, #tpu.memory_space<vmem>>, %arg3: memref<1x8x64xf32, #tpu.memory_space<vmem>>) attributes {dimension_semantics = [#tpu.dimension_semantics<parallel>], iteration_bounds = array<i64: 2>, scalar_prefetch = 0 : i64, scratch_operands = 0 : i64, tpu.core_type = #tpu.core_type<tc>, window_params = [{transform_indices = @transform_0, window_bounds = array<i64: 1, 8, 16>}, {pipeline_mode = #tpu.pipeline_mode<synchronous>, transform_indices = @transform_1, window_bounds = array<i64: 96, 128>}, {transform_indices = @transform_2, window_bounds = array<i64: 1, 8, 64>}]} {
    %c0 = arith.constant 0 : index
    %c0_0 = arith.constant 0 : index
    %c0_1 = arith.constant 0 : index
    %0 = vector.load %arg1[%c0, %c0_0, %c0_1] : memref<1x8x16xf32, #tpu.memory_space<vmem>>, vector<1x8x16xf32>
    %1 = vector.shape_cast %0 : vector<1x8x16xf32> to vector<8x16xf32>
    %c0_2 = arith.constant 0 : index
    %c0_3 = arith.constant 0 : index
    %2 = vector.load %arg2[%c0_2, %c0_3] : memref<96x128xf32, #tpu.memory_space<vmem>>, vector<16x64xf32>
    %c16 = arith.constant 16 : index
    %c0_4 = arith.constant 0 : index
    %3 = vector.load %arg2[%c16, %c0_4] : memref<96x128xf32, #tpu.memory_space<vmem>>, vector<1x64xf32>
    %c17 = arith.constant 17 : index
    %c0_5 = arith.constant 0 : index
    %4 = vector.load %arg2[%c17, %c0_5] : memref<96x128xf32, #tpu.memory_space<vmem>>, vector<1x32xf32>
    %c24 = arith.constant 24 : index
    %c0_6 = arith.constant 0 : index
    %5 = vector.load %arg2[%c24, %c0_6] : memref<96x128xf32, #tpu.memory_space<vmem>>, vector<64x32xf32>
    %c88 = arith.constant 88 : index
    %c0_7 = arith.constant 0 : index
    %6 = vector.load %arg2[%c88, %c0_7] : memref<96x128xf32, #tpu.memory_space<vmem>>, vector<8x8xf32>
    %cst = arith.constant dense<0.000000e+00> : vector<8x64xf32>
    %7 = tpu.matmul %1, %2, %cst {dimension_numbers = #tpu.dot_dimension_numbers<[1], [0], [0], [1], [0, 0, 1, 1], [], []>} : vector<8x16xf32>, vector<16x64xf32>, vector<8x64xf32> -> vector<8x64xf32>
    %8 = vector.broadcast %3 : vector<1x64xf32> to vector<8x64xf32>
    %9 = arith.addf %7, %8 : vector<8x64xf32>
    %cst_8 = arith.constant 0.000000e+00 : f32
    %10 = vector.broadcast %cst_8 : f32 to vector<8x64xf32>
    %11 = arith.maximumf %9, %10 : vector<8x64xf32>
    %cst_9 = arith.constant dense<0.000000e+00> : vector<8x32xf32>
    %12 = tpu.matmul %11, %5, %cst_9 {dimension_numbers = #tpu.dot_dimension_numbers<[1], [0], [0], [1], [0, 0, 1, 1], [], []>} : vector<8x64xf32>, vector<64x32xf32>, vector<8x32xf32> -> vector<8x32xf32>
    %13 = vector.broadcast %4 : vector<1x32xf32> to vector<8x32xf32>
    %14 = arith.addf %12, %13 : vector<8x32xf32>
    %cst_10 = arith.constant dense<0.000000e+00> : vector<8x32xf32>
    %15 = tpu.matmul %6, %14, %cst_10 {dimension_numbers = #tpu.dot_dimension_numbers<[1], [0], [0], [1], [0, 0, 1, 1], [], []>} : vector<8x8xf32>, vector<8x32xf32>, vector<8x32xf32> -> vector<8x32xf32>
    %c0_11 = arith.constant 0 : index
    %c0_12 = arith.constant 0 : index
    %c0_13 = arith.constant 0 : index
    %16 = vector.load %arg3[%c0_11, %c0_12, %c0_13] : memref<1x8x64xf32, #tpu.memory_space<vmem>>, vector<1x8x32xf32>
    %17 = vector.shape_cast %16 : vector<1x8x32xf32> to vector<8x32xf32>
    %18 = vector.shape_cast %14 : vector<8x32xf32> to vector<1x8x32xf32>
    tpu.vector_store %arg3[%c0_11, %c0_12, %c0_13], %18 {strides = array<i32>} : memref<1x8x64xf32, #tpu.memory_space<vmem>>, vector<1x8x32xf32>,
    %c0_14 = arith.constant 0 : index
    %c0_15 = arith.constant 0 : index
    %c32 = arith.constant 32 : index
    %19 = vector.load %arg3[%c0_14, %c0_15, %c32] : memref<1x8x64xf32, #tpu.memory_space<vmem>>, vector<1x8x32xf32>
    %20 = vector.shape_cast %19 : vector<1x8x32xf32> to vector<8x32xf32>
    %21 = vector.shape_cast %15 : vector<8x32xf32> to vector<1x8x32xf32>
    tpu.vector_store %arg3[%c0_14, %c0_15, %c32], %21 {strides = array<i32>} : memref<1x8x64xf32, #tpu.memory_space<vmem>>, vector<1x8x32xf32>,
    return
  }
  func.func @transform_0(%arg0: i32) -> (i32, i32, i32) {
    %c0_i32 = arith.constant 0 : i32
    %c0_i32_0 = arith.constant 0 : i32
    %c0_i32_1 = arith.constant 0 : i32
    return %arg0, %c0_i32, %c0_i32_0 : i32, i32, i32
  }
  func.func @transform_1(%arg0: i32) -> (i32, i32) {
    %c0_i32 = arith.constant 0 : i32
    %c0_i32_0 = arith.constant 0 : i32
    %c0_i32_1 = arith.constant 0 : i32
    return %c0_i32, %c0_i32_0 : i32, i32
  }
  func.func @transform_2(%arg0: i32) -> (i32, i32, i32) {
    %c0_i32 = arith.constant 0 : i32
    %c0_i32_0 = arith.constant 0 : i32
    %c0_i32_1 = arith.constant 0 : i32
    return %arg0, %c0_i32, %c0_i32_0 : i32, i32, i32
  }
}

</mosaic_0001>

<bundles_post_ra>
// kernel: context_encode_forward.1
= control target key start
LH: loop header
LB: loop body
LE: loop exit
PB: predicated region body
PF: predicated region fallthrough
CT: control target
= control target key end

     0   :  { %7 = vsyncpa [#allocation3], 0  ;;  %s1020_s0 = inlined_call_operand.hbm [shape: f32[2,8,16], index: 0, kind: input, shape index: {}]   ;;  %s1021_s1 = inlined_call_operand.hbm [shape: f32[96,128], index: 1, kind: input, shape index: {}]   ;;  %s1022_s2 = inlined_call_operand.hbm [shape: f32[2,8,64], index: 2, kind: output, shape index: {}]  }
   0x1   :  { %9 = vsyncpa [#allocation3 + $0x1], 0 }
   0x2   :  { %10 = vsyncpa [#allocation6], 0 }
   0x3   :  { %11 = vsyncpa [#allocation4], 0 }
   0x4   :  { %13 = vsyncpa [#allocation4 + $0x1], 0  ;;  %s817_s9 = smov 0   ;;  %s819_s10 = smov 0  }
   0x5   :  { %s821_s11 = smov 0   ;;  %s823_s12 = smov 0  }
   0x6 LB: > { %s838_s13 = sadd.s32 4294967295, %s791_s12   ;;  %s521_s14 = sadd.s32 4294967294, %s791_s12   ;;  %s791_s12 = sphi %s823_s12, %s1042_s12   ;;  %s787_s11 = sphi %s821_s11, %s1041_s11   ;;  %s783_s10 = sphi %s819_s10, %s1040_s10   ;;  %s779_s9 = sphi %s817_s9, %s1039_s9  }
   0x7   : > { %p39_p0 = scmp.ne.s32.totalorder %s783_s10, %s779_s9  ;;  %p1023_p1 = scmp.eq.s32.totalorder %s838_s13, 0 }
   0x8   : > { %p90_p3 = scmp.eq.s32.totalorder %s521_s14, 1  ;;  %p522_p5 = scmp.ge.s32.totalorder %s791_s12, 1 }
   0x9   : > { %p847_p4 = por %p1023_p1, %p39_p0  ;;  %p97_p7 = scmp.lt.s32.totalorder %s791_s12, 3 }
   0xa   : > { %p852_p6 = por %p90_p3, %p39_p0  ;;  %s793_s18 = smov [#allocation5]  }
   0xb   : > { %s1026_s15 = scalar_select %p847_p4, 1, 0 }
   0xc   : > { %s1027_s16 = scalar_select %p852_p6, 1, 0 }
   0xd   : > { %p857_p8 = pnand %p522_p5, %p97_p7  ;;  %s109_s19 = sshll.u32 %s793_s18, 4  ;;  %s861_s19 = int_to_ptr.vmem [resolvable:$true] %s109_s19 }
   0xe   : > { %s873_s21 = sadd.s32 1, %s791_s12   ;;  %s26_s22 = sadd.s32 1, %s787_s11 }
   0xf   : > { %s1028_s17 = scalar_select %p857_p8, 1, 0 }
  0x10   : > { %p608_p9 = pneg %p857_p8  ;;  %s23_s23 = ssub.s32 %s791_s12, %s873_s21 }
  0x11   : > { %s663_s26 = scalar_lea.hbm %s1021_s1, 1536 }
  0x12   : > { %p868_p11 = pnand %p608_p9, %p1023_p1  ;;  %p664_p12 = scmp.ne.s32.totalorder %s1021_s1, %s663_s26 }
  0x13   : > { %p670_p5 = scmp.lt.u32.totalorder %s663_s26, %s1021_s1 }
  0x14   : > { %p665_p13 = pneg %p868_p11 }
  0x16   : > { %p666_p0 = pnand %p665_p13, %p664_p12 }
  0x18   : > { %p667_p3 = pneg %p666_p0 }
  0x1a   : > { %p672_p7 = pnand %p670_p5, %p667_p3 }
  0x1c   : > { %675 = shalt.err (!%p672_p7)
}
  0x1d   : > { %s676_s3 = scalar_lea.vmem %s861_s19, 1536  ;;  %p684_p2 = scmp.lt.s32.totalorder %s861_s19, %s861_s19 }
  0x1e   : > { %p677_p9 = scmp.ne.s32.totalorder %s861_s19, %s676_s3  ;;  %p685_p6 = scmp.lt.s32.totalorder %s676_s3, %s676_s3 }
  0x20   : > { %p679_p10 = pnand %p677_p9, %p665_p13  ;;  %p686_p4 = por %p685_p6, %p684_p2 }
  0x22   : > { %p680_p1 = pneg %p679_p10 }
  0x24   : > { %p687_p8 = pnand %p686_p4, %p680_p1 }
  0x26   : > { %690 = shalt.err (!%p687_p8)
}
  0x27   : > { %s794_s4 = smov 128   ;;  %s795_s5 = smov 8  }
  0x28   : > { %611 = dma.hbm_to_vmem [thread:$0]  (!%p868_p11), %s1021_s1, 1536, %s861_s19, [#allocation6], %s794_s4, %s794_s4, %s795_s5  }
  0x29   : > { %p24_p2 = scmp.eq.s32.totalorder %s23_s23, 0  ;;  %p33_p1 = scmp.ne.s32.totalorder %s787_s11, %s783_s10 }
  0x2a   : > { %p34_p4 = scmp.eq.s32.totalorder %s791_s12, 0  ;;  %p621_p6 = scmp.lt.s32.totalorder %s791_s12, 2 }
  0x2b   : > { %s904_s8 = scalar_select %p24_p2, %s787_s11, %s26_s22  }
  0x2c   : > { %p35_p8 = por %p34_p4, %p33_p1  ;;  %p1030_p10 = scmp.eq.s32.totalorder %s838_s13, 1 }
  0x2d   : > { %s123_s18 = sand.u32 1, %s787_s11   ;;  %s526_s24 = sshll.u32 %s791_s12, 7 }
  0x2e   : > { %p908_p12 = por %p1030_p10, %p33_p1  ;;  %s525_s25 = sshll.u32 %s123_s18, 3 }
  0x2f   : > { %s917_s27 = scalar_lea.hbm %s1020_s0, %s526_s24  ;;  %s127_s19 = scalar_lea.vmem [#allocation2], %s525_s25 }
  0x30   : > { %s134_s22 = sshll.u32 %s127_s19, 4  ;;  %p919_p11 = pnand %p621_p6, %p35_p8  ;;  %s923_s22 = int_to_ptr.vmem [resolvable:$true] %s134_s22 }
  0x31   : > { %s124_s28 = scalar_lea.sflag [#allocation3], %s123_s18  ;;  %s691_s29 = scalar_lea.hbm %s917_s27, 128 }
  0x32   : > { %p692_p13 = scmp.ne.s32.totalorder %s917_s27, %s691_s29  ;;  %p693_p0 = pneg %p919_p11 }
  0x33   : > { %s696_s4 = scalar_lea.hbm %s1020_s0, 256  ;;  %p697_p7 = scmp.lt.u32.totalorder %s917_s27, %s1020_s0 }
  0x34   : > { %p694_p3 = pnand %p693_p0, %p692_p13  ;;  %p698_p9 = scmp.lt.u32.totalorder %s696_s4, %s691_s29 }
  0x35   : > { %p700_p1 = scmp.lt.u32.totalorder %s691_s29, %s917_s27 }
  0x36   : > { %p695_p5 = pneg %p694_p3  ;;  %p699_p2 = por %p698_p9, %p697_p7 }
  0x38   : > { %p701_p4 = por %p700_p1, %p699_p2 }
  0x3a   : > { %p702_p6 = pnand %p701_p4, %p695_p5 }
  0x3c   : > { %705 = shalt.err (!%p702_p6)
}
  0x3d   : > { %s706_s7 = scalar_lea.vmem %s923_s22, 128  ;;  %s796_s18 = smov [#allocation2]  }
  0x3e   : > { %p707_p8 = scmp.ne.s32.totalorder %s923_s22, %s706_s7  ;;  %s711_s24 = sshll.u32 %s796_s18, 4  ;;  %s712_s24 = int_to_ptr.vmem [resolvable:$false] %s711_s24 }
  0x3f   : > { %s713_s25 = scalar_lea.vmem %s712_s24, 256  ;;  %p714_p3 = scmp.lt.s32.totalorder %s923_s22, %s712_s24 }
  0x40   : > { %p709_p10 = pnand %p707_p8, %p693_p0  ;;  %p715_p7 = scmp.lt.s32.totalorder %s713_s25, %s706_s7 }
  0x42   : > { %p710_p13 = pneg %p709_p10  ;;  %p716_p9 = por %p715_p7, %p714_p3 }
  0x44   : > { %p717_p2 = pnand %p716_p9, %p710_p13 }
  0x46   : > { %720 = shalt.err (!%p717_p2)
}
  0x47   : > { %615 = dma.hbm_to_vmem [thread:$0]  (!%p919_p11), %s917_s27, 128, %s923_s22, %s124_s28  }
  0x48   : > { %p1033_p5 = scmp.ne.s32.totalorder %s1028_s17, 0 }
  0x49   : > { %s953_s20 = sand.u32 (!%p1033_p5), 1, %s783_s10   ;;  %p1034_p0 = scmp.ne.s32.totalorder (!%p1033_p5), %s1026_s15, 0 }
  0x4a   : > { %143 = sbr.rel (%p1033_p5) target bundleno = 863 (0x35f), region = 28  ;;  %s528_s26 = sshll.u32 (!%p1033_p5), %s953_s20, 3 }
  0x4b   : > { %s146_s19 = scalar_lea.sflag (!%p1033_p5), [#allocation3], %s953_s20  ;;  %s149_s29 = scalar_lea.vmem (!%p1033_p5), [#allocation2], %s528_s26 }
  0x51   : > { %766 = dma.done.wait (%p1034_p0), %s146_s19, 128  }
  0x52   : > { %768 = vsyncadd (%p1034_p0), %s146_s19, 4294967168  ;;  %p1035_p11 = scmp.eq.s32.totalorder %s838_s13, 0 }
  0x54   : > { %770 = dma.done.wait (%p1035_p11), [#allocation6], 1536   ;;  %p1036_p1 = pmov %p1035_p11 }
  0x55   : > { %v797_v0 = vmov 0.0|0.0   ;;  %vm798_vm0 = vmmov 0   ;;  %v799_v1 = vmov 0.0   ;;  %v175_v2 = vld [vmem:[#allocation5] sm:$0xff]  ;;  %v176_v3 = vld [vmem:[#allocation5 + $0x8] sm:$0xff]  ;;  %v179_v5 = vld [vmem:[#allocation5 + $0x18] sm:$0xff] }
  0x56   : > { %772 = vsyncadd (%p1036_p1), [#allocation6], 4294965760  ;;  %585 = vmatprep.subr.bf16.mxu0 %v797_v0  ;;  %558 = vmatprep.mubr.msk.f32.mxu0 %vm798_vm0, %v799_v1  ;;  %v586_v4 = vpack.c.bf16 %v176_v3, %v175_v2  ;;  %v180_v6 = vld [vmem:[#allocation5 + $0x20] sm:$0xff]  ;;  %v181_v7 = vld [vmem:[#allocation5 + $0x28] sm:$0xff]  ;;  %vm192_vm1 = vcmask 130048   ;;  %vm271_vm2 = vcmask 523264  }
  0x57   : > { %588 = vmatprep.subr.bf16.mxu1 %v797_v0  ;;  %577 = vmatprep.mubr.msk.f32.mxu1 %vm798_vm0, %v799_v1  ;;  %v589_v8 = vpack.c.bf16 %v180_v6, %v179_v5  ;;  %v182_v9 = vld [vmem:[#allocation5 + $0x30] sm:$0xff]  ;;  %v183_v12 = vld [vmem:[#allocation5 + $0x38] sm:$0xff]  ;;  %v184_v13 = vld [vmem:[#allocation5 + $0x40] sm:$0xff]  ;;  %vm419_vm3 = vcmask 261120   ;;  %vm345_vm4 = vcmask 64512   ;;  %s173_s15 = scalar_lea.vmem [#allocation7], %s528_s26 }
  0x58   : > { %587 = vmatpush3.bf16.msra.mxu0 %v586_v4  ;;  %v174_v10 = vld [vmem:[%s149_s29] sm:$0xff]  ;;  %v592_v11 = vpack.c.bf16 %v182_v9, %v181_v7  ;;  %v595_v14 = vpack.c.bf16 %v184_v13, %v183_v12  ;;  %v185_v15 = vld [vmem:[#allocation5 + $0x48] sm:$0xff]  ;;  %s800_s17 = smov 32   ;;  %s537_s27 = sshll.u32 %s838_s13, 7  ;;  %vm425_vm5 = vcmask 523520  }
  0x59   : > { %590 = vmatpush3.bf16.msra.mxu1 %v589_v8  ;;  %580 = vmatprep.subr.mxu0 %v799_v1  ;;  %v186_v16 = vld [vmem:[#allocation5 + $0x50] sm:$0xff]  ;;  %v187_v27 = vld [vmem:[#allocation5 + $0x58] sm:$0xff]  ;;  %s441_s22 = sshll.u32 %s173_s15, 4  ;;  %s976_s30 = scalar_lea.hbm %s1022_s2, %s537_s27  ;;  %s978_s22 = int_to_ptr.vmem [resolvable:$true] %s441_s22 }
  0x5a   : > { %591 = vmatprep.subr.bf16.mxu1 %v797_v0  ;;  %v598_v17 = vpack.c.bf16 %v186_v16, %v185_v15  ;;  %v531_v18 = vld [vmem:[#allocation5 + $0x10] ss:$0 sm:$0xff]  ;;  %v533_v23 = vld [vmem:[#allocation5 + $0x11] ss:$0 sm:$0xff]  ;;  %s428_s3 = scalar_lea.sflag [#allocation4], %s953_s20  ;;  %s721_s4 = scalar_lea.vmem %s978_s22, 128 }
  0x5b   : > { %559 = vmatmul.mubr.msk.f32.vlgmr.msra.gmra.mrb[0].mxu0 %vm192_vm1, %v174_v10  ;;  %p722_p4 = scmp.ne.s32.totalorder %s978_s22, %s721_s4  ;;  %s801_s13 = smov [#allocation7]  }
  0x5c   : > { %582 = vmatprep.mubr.msk.f32.mxu0 %vm798_vm0, %v799_v1  ;;  %s725_s5 = sshll.u32 %s801_s13, 4  ;;  %s726_s5 = int_to_ptr.vmem [resolvable:$false] %s725_s5 }
  0x5d   : > { %593 = vmatpush3.bf16.msra.mxu1 %v592_v11  ;;  %p723_p6 = pnand %p722_p4, %p908_p12  ;;  %s727_s6 = scalar_lea.vmem %s726_s5, 256 }
  0x5e   : > { %594 = vmatprep.subr.bf16.mxu1 %v797_v0  ;;  %p728_p10 = scmp.lt.s32.totalorder %s978_s22, %s726_s5  ;;  %p729_p13 = scmp.lt.s32.totalorder %s727_s6, %s721_s4 }
  0x5f   : > { %p724_p8 = pneg %p723_p6 }
  0x60   : > { %p730_p3 = por %p729_p13, %p728_p10 }
  0x61   : > { %596 = vmatpush3.bf16.msra.mxu1 %v595_v14 }
  0x62   : > { %597 = vmatprep.subr.bf16.mxu1 %v797_v0  ;;  %p731_p7 = pnand %p730_p3, %p724_p8 }
  0x65   : > { %599 = vmatpush3.bf16.msra.mxu1 %v598_v17 }
 0x12e   : > { %v262_v19 = vpop.f32.mrb[0].mxu0 }
 0x12f   : > { %v263_v20 = vadd.f32 %v531_v18, %v262_v19  ;;  %v560_v21 = vpop.f32.mrb[1].mxu0 }
 0x131   : > { %v266_v22 = vmax.f32 %v263_v20, 0.0 }
 0x133   : > { %578 = vmatmul.mubr.msk.f32.vlgmr.msra.gmra.mrb[0].mxu1 %vm271_vm2, %v266_v22 }
 0x206   : > { %v341_v24 = vpop.f32.mrb[0].mxu1 }
 0x207   : > { %v342_v25 = vadd.f32 %v533_v23, %v341_v24  ;;  %v579_v26 = vpop.f32.mrb[1].mxu1 }
 0x209   : > { %581 = vmatpush3.msra.mxu0 %v342_v25  ;;  %420 = vst.msk [vmem:[%s173_s15] sm:$0xff] %vm419_vm3, %v342_v25 }
 0x20a   : > { %583 = vmatmul.mubr.msk.f32.vlgmr.msra.gmra.mrb[2].mxu0 %vm345_vm4, %v187_v27 }
 0x2dd   : > { %v415_v28 = vpop.f32.mrb[2].mxu0 }
 0x2de   : > { %v584_v29 = vpop.f32.mrb[3].mxu0  ;;  %422 = vrot.lane.b32.xlu0 %v415_v28, %s800_s17 }
 0x350   : > { %v423_v30 = vpop.permute.xlu0 %422 }
 0x351   : > { %426 = vst.msk [vmem:[%s173_s15] sm:$0xff] %vm425_vm5, %v423_v30 }
 0x352   : > { %734 = shalt.err (!%p731_p7)
}
 0x353   : > { %s735_s7 = scalar_lea.hbm %s976_s30, 128  ;;  %s739_s25 = scalar_lea.hbm %s1022_s2, 256 }
 0x354   : > { %p736_p9 = scmp.ne.s32.totalorder %s976_s30, %s735_s7  ;;  %p740_p0 = scmp.lt.u32.totalorder %s976_s30, %s1022_s2 }
 0x355   : > { %p741_p11 = scmp.lt.u32.totalorder %s739_s25, %s735_s7  ;;  %p743_p4 = scmp.lt.u32.totalorder %s735_s7, %s976_s30 }
 0x356   : > { %p737_p2 = pnand %p736_p9, %p908_p12 }
 0x357   : > { %p742_p1 = por %p741_p11, %p740_p0 }
 0x358   : > { %p738_p5 = pneg %p737_p2 }
 0x359   : > { %p744_p6 = por %p743_p4, %p742_p1 }
 0x35b   : > { %p745_p8 = pnand %p744_p6, %p738_p5 }
 0x35d   : > { %748 = shalt.err (!%p745_p8)
}
 0x35e   : > { %606 = dma.vmem_to_hbm [thread:$0]  (%p908_p12), %s978_s22, 128, %s976_s30, %s428_s3  }
 0x35f PF: > { %s453_s19 = sand.u32 1, %s779_s9   ;;  %p1037_p10 = scmp.ne.s32.totalorder %s1027_s16, 0 }
 0x360   : > { %p1038_p13 = scmp.ge.s32.totalorder %s791_s12, 2  ;;  %s454_s29 = scalar_lea.sflag [#allocation4], %s453_s19 }
 0x362   : > { %p617_p3 = pnand %p1038_p13, %p1037_p10 }
 0x364   : > { %774 = dma.done.wait (!%p617_p3), %s454_s29, 128  }
 0x365   : > { %776 = vsyncadd (!%p617_p3), %s454_s29, 4294967168  ;;  %p16_p7 = scmp.ge.s32.totalorder %s873_s21, 4   ;;  %s1039_s9 = smov %s783_s10 }
 0x366   : > { %s1040_s10 = smov %s787_s11  ;;  %s1041_s11 = smov %s904_s8 }
 0x367   : > { %s1042_s12 = smov %s873_s21  ;;  %18 = sbr.rel (!%p16_p7) target bundleno = 6 (0x6), region = 77 }
 0x36e   :  { %459 = vsyncpa [#allocation3], 1 }
 0x36f   :  { %461 = vsyncpa [#allocation3 + $0x1], 1 }
 0x370   :  { %462 = vsyncpa [#allocation6], 1 }
 0x371   :  { %463 = vsyncpa [#allocation4], 1 }
 0x372   :  { %465 = vsyncpa [#allocation4 + $0x1], 1 }

</bundles_post_ra>
